<compile_context>
chip_gen: v5e
topology: v5e:2x2
jax: 0.10.0
libtpu: 0.0.40
codegen_flags: <defaults>
</compile_context>

<pallas_src>
import jax
import jax.numpy as jnp
from jax.experimental import pallas as pl
from jax.experimental.pallas import tpu as pltpu

IN_F = 16                       # nn.Linear in_features
OUT_F = 8                       # nn.Linear out_features
REPEAT = 4                      # torch.cat((x, x, x, x), dim=-1)
OUT_W = OUT_F * REPEAT          # 32 logical output features
PACK = 128 // IN_F              # 8 logical rows packed per lane-dense row
K_PACKED = PACK * IN_F          # 128 -> one full MXU pass of K
N_PACKED = PACK * OUT_W         # 256 -> lane-dense, unmasked stores


def fused_linear_relu_cat_kernel(x_ref, w_ref, b_ref, o_ref):
    # x_ref: (tb, 128)  packed batch tile
    # w_ref: (128, 256) block-diagonal [8 x (16,32)] repeated weight (resident)
    # b_ref: (1, 256)   repeated bias (resident)
    # o_ref: (tb, 256)  packed output tile (single wide store)
    y = jnp.dot(x_ref[...], w_ref[...], preferred_element_type=jnp.float32)
    y = y + b_ref[...]
    o_ref[...] = jnp.maximum(y, 0.0).astype(o_ref.dtype)


def model_forward(x, w, b, *, block_rows=16384, force_pallas=False):
    """x: (B, 16); w: (8, 16) (PyTorch convention); b: (8,).

    Returns relu(x @ w.T + b) concatenated 4x along the last dim -> (B, 32).
    """
    B = x.shape[0]
    dtype = x.dtype
    itemsize = jnp.dtype(dtype).itemsize

    # Fold the x4 cat into the params (ReLU commutes with the lane repeat).
    wt_rep = jnp.tile(jnp.asarray(w, dtype).T, (1, REPEAT))       # (16, 32)
    b_rep = jnp.tile(jnp.asarray(b, dtype).reshape(-1), REPEAT)   # (32,)

    # Small-batch fast path: pad + launch overhead dwarfs the math.
    if not force_pallas and B < 1024:
        return jnp.maximum(x @ wt_rep + b_rep[None, :], 0.0)

    # Lane-dense repack: block-diagonal weight and repeated bias.
    w_big = jnp.kron(jnp.eye(PACK, dtype=dtype), wt_rep)          # (128, 256)
    b_big = jnp.tile(b_rep, PACK).reshape(1, N_PACKED)            # (1, 256)

    # Packed-row tile: sublane-aligned for the dtype (8 rows f32 / 16 rows bf16),
    # capped so double-buffered in+out stays small (~6 MiB at defaults), sized
    # to amortize per-grid-step overhead.
    sub = max(8, 32 // itemsize)
    n_pack = pl.cdiv(B, PACK)
    tb = max(sub, min(block_rows // PACK, n_pack))
    tb = ((tb + sub - 1) // sub) * sub
    n_pack_padded = pl.cdiv(n_pack, tb) * tb
    Bp = n_pack_padded * PACK
    if Bp != B:
        x = jnp.pad(x, ((0, Bp - B), (0, 0)))
    x_packed = x.reshape(n_pack_padded, K_PACKED)  # free row-major view

    grid = (n_pack_padded // tb,)
    out_packed = pl.pallas_call(
        fused_linear_relu_cat_kernel,
        out_shape=jax.ShapeDtypeStruct((n_pack_padded, N_PACKED), dtype),
        grid_spec=pl.GridSpec(
            grid=grid,
            in_specs=[
                pl.BlockSpec((tb, K_PACKED), lambda i: (i, 0)),         # batch tile
                pl.BlockSpec((K_PACKED, N_PACKED), lambda i: (0, 0)),   # weight resident
                pl.BlockSpec((1, N_PACKED), lambda i: (0, 0)),          # bias resident
            ],
            out_specs=pl.BlockSpec((tb, N_PACKED), lambda i: (i, 0)),
        ),
        compiler_params=pltpu.CompilerParams(
            dimension_semantics=("parallel",),  # shard batch tiles across TCs (v7x)
        ),
        cost_estimate=pl.CostEstimate(
            flops=2 * n_pack_padded * K_PACKED * N_PACKED,
            transcendentals=0,
            bytes_accessed=(n_pack_padded * (K_PACKED + N_PACKED) * itemsize
                            + K_PACKED * N_PACKED * itemsize),
        ),
    )(x_packed, w_big, b_big)

    # Free row-major view back to logical (B, 32) rows.
    out = out_packed.reshape(Bp, OUT_W)
    return out[:B]


if __name__ == "__main__":
    key = jax.random.PRNGKey(0)
    kx, kw, kb = jax.random.split(key, 3)

    # Input matches the PyTorch script: x = torch.randn(7, 16)
    x = jax.random.normal(kx, (7, IN_F), dtype=jnp.float32)

    # Deterministic nn.Linear(16, 8) params (torch default init: U(-1/sqrt(in), 1/sqrt(in)))
    bound = 1.0 / jnp.sqrt(jnp.float32(IN_F))
    w = jax.random.uniform(kw, (OUT_F, IN_F), dtype=jnp.float32, minval=-bound, maxval=bound)
    b = jax.random.uniform(kb, (OUT_F,), dtype=jnp.float32, minval=-bound, maxval=bound)

    # Reference in plain JAX: Linear -> ReLU -> cat x4
    y_ref = jnp.maximum(x @ w.T + b[None, :], 0.0)
    ref = jnp.concatenate([y_ref] * REPEAT, axis=-1)

    # Force the Pallas path so the kernel is actually exercised at the spec shape.
    out = model_forward(x, w, b, force_pallas=True)
    jax.block_until_ready(out)
    assert out.shape == (7, OUT_W), out.shape
    assert jnp.allclose(out, ref, atol=1e-5, rtol=1e-5)

    # Default path (small-batch fast path) must agree too.
    out_fast = model_forward(x, w, b)
    jax.block_until_ready(out_fast)
    assert jnp.allclose(out_fast, ref, atol=1e-5, rtol=1e-5)

    print("KERNEL_OK")
</pallas_src>

<mosaic_0001>
module attributes {stable_mosaic.version = 11 : i64} {
  func.func @fused_linear_relu_cat_kernel(%arg0: i32, %arg1: memref<8x128xf32, #tpu.memory_space<vmem>>, %arg2: memref<128x256xf32, #tpu.memory_space<vmem>>, %arg3: memref<1x256xf32, #tpu.memory_space<vmem>>, %arg4: memref<8x256xf32, #tpu.memory_space<vmem>>) attributes {dimension_semantics = [#tpu.dimension_semantics<parallel>], iteration_bounds = array<i64: 1>, scalar_prefetch = 0 : i64, scratch_operands = 0 : i64, tpu.core_type = #tpu.core_type<tc>, window_params = [{transform_indices = @transform_0, window_bounds = array<i64: 8, 128>}, {pipeline_mode = #tpu.pipeline_mode<synchronous>, transform_indices = @transform_1, window_bounds = array<i64: 128, 256>}, {pipeline_mode = #tpu.pipeline_mode<synchronous>, transform_indices = @transform_2, window_bounds = array<i64: 1, 256>}, {transform_indices = @transform_3, window_bounds = array<i64: 8, 256>}]} {
    %c0 = arith.constant 0 : index
    %c0_0 = arith.constant 0 : index
    %0 = vector.load %arg1[%c0, %c0_0] : memref<8x128xf32, #tpu.memory_space<vmem>>, vector<8x128xf32>
    %c0_1 = arith.constant 0 : index
    %c0_2 = arith.constant 0 : index
    %1 = vector.load %arg2[%c0_1, %c0_2] : memref<128x256xf32, #tpu.memory_space<vmem>>, vector<128x256xf32>
    %cst = arith.constant dense<0.000000e+00> : vector<8x256xf32>
    %2 = tpu.matmul %0, %1, %cst {dimension_numbers = #tpu.dot_dimension_numbers<[1], [0], [0], [1], [0, 0, 1, 1], [], []>} : vector<8x128xf32>, vector<128x256xf32>, vector<8x256xf32> -> vector<8x256xf32>
    %c0_3 = arith.constant 0 : index
    %c0_4 = arith.constant 0 : index
    %3 = vector.load %arg3[%c0_3, %c0_4] : memref<1x256xf32, #tpu.memory_space<vmem>>, vector<1x256xf32>
    %4 = vector.broadcast %3 : vector<1x256xf32> to vector<8x256xf32>
    %5 = arith.addf %2, %4 : vector<8x256xf32>
    %cst_5 = arith.constant 0.000000e+00 : f32
    %6 = vector.broadcast %cst_5 : f32 to vector<8x256xf32>
    %7 = arith.maximumf %5, %6 : vector<8x256xf32>
    %c0_6 = arith.constant 0 : index
    %c0_7 = arith.constant 0 : index
    %8 = vector.load %arg4[%c0_6, %c0_7] : memref<8x256xf32, #tpu.memory_space<vmem>>, vector<8x256xf32>
    tpu.vector_store %arg4[%c0_6, %c0_7], %7 {strides = array<i32>} : memref<8x256xf32, #tpu.memory_space<vmem>>, vector<8x256xf32>,
    return
  }
  func.func @transform_0(%arg0: i32) -> (i32, i32) {
    %c0_i32 = arith.constant 0 : i32
    %c0_i32_0 = arith.constant 0 : i32
    return %arg0, %c0_i32 : i32, i32
  }
  func.func @transform_1(%arg0: i32) -> (i32, i32) {
    %c0_i32 = arith.constant 0 : i32
    %c0_i32_0 = arith.constant 0 : i32
    %c0_i32_1 = arith.constant 0 : i32
    return %c0_i32, %c0_i32_0 : i32, i32
  }
  func.func @transform_2(%arg0: i32) -> (i32, i32) {
    %c0_i32 = arith.constant 0 : i32
    %c0_i32_0 = arith.constant 0 : i32
    %c0_i32_1 = arith.constant 0 : i32
    return %c0_i32, %c0_i32_0 : i32, i32
  }
  func.func @transform_3(%arg0: i32) -> (i32, i32) {
    %c0_i32 = arith.constant 0 : i32
    %c0_i32_0 = arith.constant 0 : i32
    return %arg0, %c0_i32 : i32, i32
  }
}

</mosaic_0001>

<bundles_post_ra>
// kernel: tpu_custom_call.1
= control target key start
LH: loop header
LB: loop body
LE: loop exit
PB: predicated region body
PF: predicated region fallthrough
CT: control target
= control target key end

     0   :  { %8 = vsyncpa [#allocation3], 0  ;;  %s305_s0 = inlined_call_operand.hbm [shape: f32[8,128], index: 0, kind: input, shape index: {}]   ;;  %s306_s1 = inlined_call_operand.hbm [shape: f32[128,256], index: 1, kind: input, shape index: {}]   ;;  %s307_s2 = inlined_call_operand.hbm [shape: f32[1,256], index: 2, kind: input, shape index: {}]   ;;  %s308_s3 = inlined_call_operand.hbm [shape: f32[8,256], index: 3, kind: output, shape index: {}]  }
   0x1   :  { %9 = vsyncpa [#allocation6], 0  ;;  %s26_s14 = sshll.u32 %s306_s1, 4  ;;  %s27_s14 = int_to_ptr.hbm [resolvable:$true] %s26_s14 }
   0x2   :  { %10 = vsyncpa [#allocation4], 0  ;;  %s267_s15 = smov [#allocation5]   ;;  %s16_s19 = sshll.u32 %s305_s0, 4  ;;  %s17_s19 = int_to_ptr.hbm [resolvable:$true] %s16_s19 }
   0x3   :  { %s28_s16 = sshll.u32 %s267_s15, 4  ;;  %s268_s20 = smov 256   ;;  %s29_s16 = int_to_ptr.vmem [resolvable:$true] %s28_s16 }
   0x4   :  { %s269_s21 = smov 16   ;;  %s270_s22 = smov [#allocation2]  }
   0x5   :  { %34 = dma.hbm_to_vmem [thread:$0]  %s27_s14, 4096, %s29_s16, [#allocation6], %s268_s20, %s268_s20, %s269_s21  }
   0x6   :  { %s18_s23 = sshll.u32 %s270_s22, 4  ;;  %s40_s26 = sshll.u32 %s307_s2, 4  ;;  %s19_s23 = int_to_ptr.vmem [resolvable:$true] %s18_s23  ;;  %s41_s26 = int_to_ptr.hbm [resolvable:$true] %s40_s26 }
   0x7   :  { %21 = dma.hbm_to_vmem [thread:$0]  %s17_s19, 128, %s19_s23, [#allocation3]  }
   0x8   :  { %s271_s1 = smov [#allocation7]  }
   0x9   :  { %s42_s27 = sshll.u32 %s271_s1, 4  ;;  %s43_s27 = int_to_ptr.vmem [resolvable:$true] %s42_s27 }
   0xa   :  { %45 = dma.hbm_to_vmem [thread:$0]  %s41_s26, 32, %s43_s27, [#allocation6]  }
   0xb   :  { %261 = dma.done.wait [#allocation3], 128  }
   0xc   :  { %262 = vsyncadd [#allocation3], 4294967168 }
   0xd   :  { %263 = dma.done.wait [#allocation6], 4128  }
   0xe   :  { %264 = vsyncadd [#allocation6], 4294963168  ;;  %v89_v0 = vld [vmem:[#allocation5 + $0xf0] sm:$0xff]  ;;  %v90_v1 = vld [vmem:[#allocation5 + $0xf8] sm:$0xff]  ;;  %s272_s0 = smov [#allocation8]   ;;  %s148_s30 = sshll.u32 %s308_s3, 4  ;;  %s149_s30 = int_to_ptr.hbm [resolvable:$true] %s148_s30 }
   0xf   :  { %v87_v2 = vld [vmem:[#allocation5 + $0xe0] sm:$0xff]  ;;  %97 = vmatpush.msra.mxu0 %v89_v0  ;;  %117 = vmatpush.msra.mxu1 %v90_v1  ;;  %v88_v3 = vld [vmem:[#allocation5 + $0xe8] sm:$0xff]  ;;  %v85_v4 = vld [vmem:[#allocation5 + $0xd0] sm:$0xff]  ;;  %s146_s2 = sshll.u32 %s272_s0, 4  ;;  %s147_s2 = int_to_ptr.vmem [resolvable:$true] %s146_s2 }
  0x10   :  { %v86_v5 = vld [vmem:[#allocation5 + $0xd8] sm:$0xff]  ;;  %v83_v6 = vld [vmem:[#allocation5 + $0xc0] sm:$0xff]  ;;  %v84_v7 = vld [vmem:[#allocation5 + $0xc8] sm:$0xff] }
  0x11   :  { %98 = vmatpush.msra.mxu0 %v87_v2  ;;  %118 = vmatpush.msra.mxu1 %v88_v3  ;;  %v81_v8 = vld [vmem:[#allocation5 + $0xb0] sm:$0xff]  ;;  %v82_v9 = vld [vmem:[#allocation5 + $0xb8] sm:$0xff]  ;;  %v79_v10 = vld [vmem:[#allocation5 + $0xa0] sm:$0xff] }
  0x12   :  { %v80_v11 = vld [vmem:[#allocation5 + $0xa8] sm:$0xff]  ;;  %v77_v12 = vld [vmem:[#allocation5 + $0x90] sm:$0xff]  ;;  %v78_v13 = vld [vmem:[#allocation5 + $0x98] sm:$0xff] }
  0x13   :  { %99 = vmatpush.msra.mxu0 %v85_v4  ;;  %119 = vmatpush.msra.mxu1 %v86_v5  ;;  %v75_v14 = vld [vmem:[#allocation5 + $0x80] sm:$0xff]  ;;  %v76_v15 = vld [vmem:[#allocation5 + $0x88] sm:$0xff]  ;;  %v73_v16 = vld [vmem:[#allocation5 + $0x70] sm:$0xff] }
  0x14   :  { %v74_v17 = vld [vmem:[#allocation5 + $0x78] sm:$0xff]  ;;  %v71_v18 = vld [vmem:[#allocation5 + $0x60] sm:$0xff]  ;;  %v72_v19 = vld [vmem:[#allocation5 + $0x68] sm:$0xff] }
  0x15   :  { %100 = vmatpush.msra.mxu0 %v83_v6  ;;  %120 = vmatpush.msra.mxu1 %v84_v7  ;;  %v69_v20 = vld [vmem:[#allocation5 + $0x50] sm:$0xff]  ;;  %v70_v21 = vld [vmem:[#allocation5 + $0x58] sm:$0xff]  ;;  %v67_v22 = vld [vmem:[#allocation5 + $0x40] sm:$0xff] }
  0x16   :  { %v68_v23 = vld [vmem:[#allocation5 + $0x48] sm:$0xff]  ;;  %v65_v24 = vld [vmem:[#allocation5 + $0x30] sm:$0xff]  ;;  %v66_v25 = vld [vmem:[#allocation5 + $0x38] sm:$0xff] }
  0x17   :  { %101 = vmatpush.msra.mxu0 %v81_v8  ;;  %121 = vmatpush.msra.mxu1 %v82_v9  ;;  %v63_v26 = vld [vmem:[#allocation5 + $0x20] sm:$0xff]  ;;  %v64_v27 = vld [vmem:[#allocation5 + $0x28] sm:$0xff]  ;;  %v61_v28 = vld [vmem:[#allocation5 + $0x10] sm:$0xff] }
  0x18   :  { %v62_v29 = vld [vmem:[#allocation5 + $0x18] sm:$0xff]  ;;  %v59_v30 = vld [vmem:[#allocation5] sm:$0xff]  ;;  %v60_v31 = vld [vmem:[#allocation5 + $0x8] sm:$0xff] }
  0x19   :  { %102 = vmatpush.msra.mxu0 %v79_v10  ;;  %122 = vmatpush.msra.mxu1 %v80_v11  ;;  %v58_v32 = vld [vmem:[#allocation2] sm:$0xff]  ;;  %v91_v33 = vld [vmem:[#allocation7] sm:$0x3] }
  0x1a   :  { %v93_v34 = vperm.slane %v91_v33, 0  ;;  %v94_v35 = vperm.slane %v91_v33, 1 }
  0x1b   :  { %103 = vmatpush.msra.mxu0 %v77_v12  ;;  %123 = vmatpush.msra.mxu1 %v78_v13 }
  0x1d   :  { %104 = vmatpush.msra.mxu0 %v75_v14  ;;  %124 = vmatpush.msra.mxu1 %v76_v15 }
  0x1f   :  { %105 = vmatpush.msra.mxu0 %v73_v16  ;;  %125 = vmatpush.msra.mxu1 %v74_v17 }
  0x21   :  { %106 = vmatpush.msra.mxu0 %v71_v18  ;;  %126 = vmatpush.msra.mxu1 %v72_v19 }
  0x23   :  { %107 = vmatpush.msra.mxu0 %v69_v20  ;;  %127 = vmatpush.msra.mxu1 %v70_v21 }
  0x25   :  { %108 = vmatpush.msra.mxu0 %v67_v22  ;;  %128 = vmatpush.msra.mxu1 %v68_v23 }
  0x27   :  { %109 = vmatpush.msra.mxu0 %v65_v24  ;;  %129 = vmatpush.msra.mxu1 %v66_v25 }
  0x29   :  { %110 = vmatpush.msra.mxu0 %v63_v26  ;;  %130 = vmatpush.msra.mxu1 %v64_v27 }
  0x2b   :  { %111 = vmatpush.msra.mxu0 %v61_v28  ;;  %131 = vmatpush.msra.mxu1 %v62_v29 }
  0x2d   :  { %112 = vmatpush.msra.mxu0 %v59_v30  ;;  %132 = vmatpush.msra.mxu1 %v60_v31 }
  0x2e   :  { %113 = vmatmul.f32.vlgmr.msra.gmra.mxu0 %v58_v32  ;;  %133 = vmatmul.f32.vlgmr.msra.gmra.mxu1 %v58_v32 }
  0xab   :  { %v114_v36 = vpop.f32.mrf.mxu0  ;;  %v134_v37 = vpop.f32.mrf.mxu1 }
  0xac   :  { %v115_v38 = vadd.f32 %v114_v36, %v93_v34  ;;  %v135_v39 = vadd.f32 %v134_v37, %v94_v35 }
  0xae   :  { %v137_v40 = vmax.f32 %v115_v38, 0.0  ;;  %v138_v41 = vmax.f32 %v135_v39, 0.0 }
  0xb0   :  { %139 = vst [vmem:[#allocation8] sm:$0xff] %v137_v40 }
  0xb1   :  { %140 = vst [vmem:[#allocation8 + $0x8] sm:$0xff] %v138_v41 }
  0xb2   :  { %151 = dma.vmem_to_hbm [thread:$0]  %s147_s2, 256, %s149_s30, [#allocation4]  }
  0xb3   :  { %265 = dma.done.wait [#allocation4], 256  }
  0xb4   :  { %266 = vsyncadd [#allocation4], 4294967040 }
  0xb5   :  { %156 = vsyncpa [#allocation3], 1 }
  0xb6   :  { %157 = vsyncpa [#allocation6], 1 }
  0xb7   :  { %158 = vsyncpa [#allocation4], 1 }

</bundles_post_ra>
